<compile_context>
chip_gen: v7x
topology: tpu7x:2x2x1
jax: 0.10.0
libtpu: 0.0.40
codegen_flags: <defaults>
</compile_context>

<pallas_src>
import functools

import jax
import jax.numpy as jnp
from jax.experimental import pallas as pl
from jax.experimental.pallas import tpu as pltpu


def _round_up(x: int, m: int) -> int:
    return ((x + m - 1) // m) * m


def _choose_tile(size: int, align: int, cap: int) -> int:
    """Largest multiple of `align` that divides `size` (itself a multiple of `align`) and <= cap."""
    cap = max(cap, align)
    best = align
    for t in range(align, min(size, cap) + 1, align):
        if size % t == 0:
            best = t
    return best


def _tile_caps(compute_itemsize: int):
    """Generation-aware tile caps. v7x has 64 MiB VMEM/TC; v5e/v6e have 128 MiB."""
    tm_cap, tn_cap, tk_cap = 256, 512, 1024
    try:
        vmem = getattr(pltpu.get_tpu_info(), "vmem_capacity_bytes", None)
        if vmem is not None and vmem >= (96 << 20):      # v5e / v6e: room for bigger blocks
            tn_cap, tk_cap = 1024, 2048
    except Exception:
        pass
    if compute_itemsize <= 2:                            # bf16/fp8 tiles are half/quarter size
        tk_cap *= 2
    return tm_cap, tn_cap, tk_cap


def _disentangler_kernel(x_ref, w_ref, b_ref, o_ref, acc_ref, *, activation, precision):
    k = pl.program_id(2)

    @pl.when(k == 0)
    def _init():
        acc_ref[...] = jnp.zeros_like(acc_ref)

    # MXU matmul with f32 accumulation (inputs may be f32 or bf16).
    acc_ref[...] += jnp.dot(x_ref[...], w_ref[...],
                            preferred_element_type=jnp.float32, precision=precision)

    @pl.when(k == pl.num_programs(2) - 1)
    def _finalize():
        z = acc_ref[...] + b_ref[...]                    # bias broadcast over rows, f32
        if activation == "tanh":
            y = jnp.tanh(z)                              # single EUP transcendental
        else:                                            # sigmoid(z) == 0.5*tanh(z/2) + 0.5
            y = 0.5 * jnp.tanh(0.5 * z) + 0.5            # one EUP op, no exp + divide
        o_ref[...] = y.astype(o_ref.dtype)


def _reference_forward(x, w, b, activation):
    z = jnp.dot(x, w, preferred_element_type=jnp.float32) + b.astype(jnp.float32)
    y = jnp.tanh(z) if activation == "tanh" else jax.nn.sigmoid(z)
    return y.astype(x.dtype)


def disentangler_german(x, w, b, activation="tanh", *,
                        compute_dtype=None, precision=None, use_pallas=None):
    """y = act(x @ w + b).

    x: (B, in_dim), w: (in_dim, out_dim) (PyTorch weight.T), b: (out_dim,).
    compute_dtype: optionally cast x/w (e.g. jnp.bfloat16) to halve the weight-stream HBM
      traffic; accumulation and the bias/activation epilogue stay in f32.
    precision: forwarded to jnp.dot (pass jax.lax.Precision.HIGHEST for bit-accurate f32).
    use_pallas: None = auto (tiny layers fall back to plain XLA), True/False to force.
    """
    if activation not in ("tanh", "sigmoid"):
        raise NotImplementedError(f"ERROR: Unknown activation {activation}")

    B, in_dim = x.shape
    if w.shape[0] != in_dim:
        raise ValueError(f"weight shape {w.shape} incompatible with input dim {in_dim}")
    out_dim = w.shape[1]
    if b.shape != (out_dim,):
        raise ValueError(f"bias shape {b.shape} incompatible with out_dim {out_dim}")

    if use_pallas is None:
        # Tiny layers: fixed pallas_call/DMA overhead dominates; XLA's fused path wins.
        use_pallas = (B * in_dim * out_dim) >= (1 << 18)
    if not use_pallas:
        return _reference_forward(x, w, b, activation)

    out_dtype = x.dtype
    cdt = jnp.dtype(compute_dtype) if compute_dtype is not None else jnp.dtype(x.dtype)
    in_isz = cdt.itemsize
    out_isz = jnp.dtype(out_dtype).itemsize

    # Base alignment only: M to the sublane pack (8 f32 / 16 bf16), K and N to the 128-lane vreg.
    m_align = max(8, 32 // in_isz)
    Mp, Kp, Np = _round_up(B, m_align), _round_up(in_dim, 128), _round_up(out_dim, 128)

    tm_cap, tn_cap, tk_cap = _tile_caps(in_isz)
    tm = _choose_tile(Mp, m_align, tm_cap)
    tn = _choose_tile(Np, 128, tn_cap)
    tk = _choose_tile(Kp, 128, tk_cap)

    # v7x megacore: ensure the "parallel" (M, N) axes have >= 2 blocks so both TensorCores
    # get work (harmless on single-TC v5e/v6e).
    if Mp // tm == 1 and Np // tn == 1 and Np >= 256:
        tn = _choose_tile(Np, 128, Np // 2)

    # Cast / pad only when needed (each is an extra HBM pass on the activations/weights).
    xp = x if x.dtype == cdt else x.astype(cdt)
    if (Mp, Kp) != (B, in_dim):
        xp = jnp.pad(xp, ((0, Mp - B), (0, Kp - in_dim)))
    wp = w if w.dtype == cdt else w.astype(cdt)
    if (Kp, Np) != (in_dim, out_dim):
        wp = jnp.pad(wp, ((0, Kp - in_dim), (0, Np - out_dim)))
    bp = b.reshape(1, out_dim).astype(jnp.float32)
    if Np != out_dim:
        bp = jnp.pad(bp, ((0, 0), (0, Np - out_dim)))

    gm, gn, gk = Mp // tm, Np // tn, Kp // tk
    grid = (gm, gn, gk)

    # Double-buffered x/w/out tiles + bias tile + resident f32 accumulator, with headroom.
    vmem_bytes = (2 * tm * tk * in_isz + 2 * tk * tn * in_isz
                  + 2 * tm * tn * out_isz + 2 * tn * 4 + tm * tn * 4)
    vmem_limit = int(max(vmem_bytes + (8 << 20), 32 << 20))

    # x is re-read once per N-block, w once per M-block under the (i, j, k) grid order.
    cost = pl.CostEstimate(
        flops=2 * Mp * Kp * Np,
        transcendentals=Mp * Np,
        bytes_accessed=(Mp * Kp * in_isz) * gn + (Kp * Np * in_isz) * gm
                       + Np * 4 * gm + Mp * Np * out_isz,
    )

    out = pl.pallas_call(
        functools.partial(_disentangler_kernel, activation=activation, precision=precision),
        out_shape=jax.ShapeDtypeStruct((Mp, Np), out_dtype),
        grid_spec=pltpu.PrefetchScalarGridSpec(
            num_scalar_prefetch=0,
            grid=grid,
            in_specs=[
                pl.BlockSpec((tm, tk), lambda i, j, k: (i, k)),   # x tile
                pl.BlockSpec((tk, tn), lambda i, j, k: (k, j)),   # w tile (batch-invariant)
                pl.BlockSpec((1, tn), lambda i, j, k: (0, j)),    # bias tile (M/K-invariant)
            ],
            out_specs=pl.BlockSpec((tm, tn), lambda i, j, k: (i, j)),
            scratch_shapes=[pltpu.VMEM((tm, tn), jnp.float32)],
        ),
        compiler_params=pltpu.CompilerParams(
            dimension_semantics=("parallel", "parallel", "arbitrary"),
            vmem_limit_bytes=vmem_limit,
        ),
        cost_estimate=cost,
    )(xp, wp, bp)

    if (Mp, Np) != (B, out_dim):
        out = out[:B, :out_dim]
    return out


if __name__ == "__main__":
    key = jax.random.PRNGKey(0)

    # Small shapes consistent with the module: Linear(in_dim, out_dim) + tanh.
    batch, in_dim, out_dim = 8, 32, 32
    kx, kw, kb = jax.random.split(key, 3)
    bound = 1.0 / jnp.sqrt(jnp.float32(in_dim))
    w = jax.random.uniform(kw, (in_dim, out_dim), jnp.float32, -bound, bound)
    b = jax.random.uniform(kb, (out_dim,), jnp.float32, -bound, bound)
    x = jax.random.normal(kx, (batch, in_dim), jnp.float32)

    # Force the Pallas path even at this tiny size (auto-dispatch would use plain XLA here).
    y = disentangler_german(x, w, b, activation="tanh", use_pallas=True)
    jax.block_until_ready(y)
    y_ref = jnp.tanh(x @ w + b)
    assert y.shape == (batch, out_dim)
    assert jnp.allclose(y, y_ref, atol=1e-5, rtol=1e-5)

    # Sigmoid activation (single-tanh epilogue) on the same tiny shape.
    ys = disentangler_german(x, w, b, activation="sigmoid", use_pallas=True)
    jax.block_until_ready(ys)
    ys_ref = jax.nn.sigmoid(x @ w + b)
    assert jnp.allclose(ys, ys_ref, atol=1e-5, rtol=1e-5)

    # Multi-tile pipelined path with non-tile-aligned dims (exercises the alignment-only
    # padding + divisor tile selection; auto-dispatch picks the Pallas kernel here).
    k2x, k2w, k2b = jax.random.split(jax.random.PRNGKey(1), 3)
    B2, K2, N2 = 300, 384, 640
    bound2 = 1.0 / jnp.sqrt(jnp.float32(K2))
    w2 = jax.random.uniform(k2w, (K2, N2), jnp.float32, -bound2, bound2)
    b2 = jax.random.uniform(k2b, (N2,), jnp.float32, -bound2, bound2)
    x2 = jax.random.normal(k2x, (B2, K2), jnp.float32)
    y2 = disentangler_german(x2, w2, b2, activation="tanh")
    jax.block_until_ready(y2)
    y2_ref = jnp.tanh(x2 @ w2 + b2)
    assert y2.shape == (B2, N2)
    # Loose tolerance: default-precision MXU passes vs. XLA reference matmul rounding.
    assert jnp.allclose(y2, y2_ref, atol=1e-3, rtol=1e-3)

    # bf16 weight-streaming path (halves the dominant HBM weight traffic), f32 accumulation.
    y3 = disentangler_german(x2, w2, b2, activation="tanh", compute_dtype=jnp.bfloat16)
    jax.block_until_ready(y3)
    assert jnp.allclose(y3, y2_ref, atol=3e-2, rtol=3e-2)

    print("KERNEL_OK")
</pallas_src>

<mosaic_0001>
module attributes {stable_mosaic.version = 11 : i64} {
  func.func @_disentangler_kernel(%arg0: i32, %arg1: i32, %arg2: i32, %arg3: memref<8x128xf32, #tpu.memory_space<vmem>>, %arg4: memref<128x128xf32, #tpu.memory_space<vmem>>, %arg5: memref<1x128xf32, #tpu.memory_space<vmem>>, %arg6: memref<8x128xf32, #tpu.memory_space<vmem>>, %arg7: memref<8x128xf32, #tpu.memory_space<vmem>>) attributes {dimension_semantics = [#tpu.dimension_semantics<parallel>, #tpu.dimension_semantics<parallel>, #tpu.dimension_semantics<arbitrary>], iteration_bounds = array<i64: 1, 1, 1>, scalar_prefetch = 0 : i64, scratch_operands = 1 : i64, tpu.core_type = #tpu.core_type<tc>, window_params = [{transform_indices = @transform_0, window_bounds = array<i64: 8, 128>}, {transform_indices = @transform_1, window_bounds = array<i64: 128, 128>}, {transform_indices = @transform_2, window_bounds = array<i64: 1, 128>}, {transform_indices = @transform_3, window_bounds = array<i64: 8, 128>}]} {
    %c0_i32 = arith.constant 0 : i32
    %0 = arith.cmpi eq, %arg2, %c0_i32 : i32
    %1 = arith.extui %0 : i1 to i32
    %c0_i32_0 = arith.constant 0 : i32
    %2 = arith.cmpi ne, %1, %c0_i32_0 : i32
    scf.if %2 {
      %cst_10 = arith.constant 0.000000e+00 : f32
      %12 = vector.broadcast %cst_10 : f32 to vector<8x128xf32>
      %c0_11 = arith.constant 0 : index
      %c0_12 = arith.constant 0 : index
      %13 = vector.load %arg7[%c0_11, %c0_12] : memref<8x128xf32, #tpu.memory_space<vmem>>, vector<8x128xf32>
      tpu.vector_store %arg7[%c0_11, %c0_12], %12 {strides = array<i32>} : memref<8x128xf32, #tpu.memory_space<vmem>>, vector<8x128xf32>,
    } else {
    }
    %c0 = arith.constant 0 : index
    %c0_1 = arith.constant 0 : index
    %3 = vector.load %arg7[%c0, %c0_1] : memref<8x128xf32, #tpu.memory_space<vmem>>, vector<8x128xf32>
    %c0_2 = arith.constant 0 : index
    %c0_3 = arith.constant 0 : index
    %4 = vector.load %arg3[%c0_2, %c0_3] : memref<8x128xf32, #tpu.memory_space<vmem>>, vector<8x128xf32>
    %c0_4 = arith.constant 0 : index
    %c0_5 = arith.constant 0 : index
    %5 = vector.load %arg4[%c0_4, %c0_5] : memref<128x128xf32, #tpu.memory_space<vmem>>, vector<128x128xf32>
    %cst = arith.constant dense<0.000000e+00> : vector<8x128xf32>
    %6 = tpu.matmul %4, %5, %cst {dimension_numbers = #tpu.dot_dimension_numbers<[1], [0], [0], [1], [0, 0, 1, 1], [], []>} : vector<8x128xf32>, vector<128x128xf32>, vector<8x128xf32> -> vector<8x128xf32>
    %7 = arith.addf %3, %6 : vector<8x128xf32>
    %c0_6 = arith.constant 0 : index
    %c0_7 = arith.constant 0 : index
    %8 = vector.load %arg7[%c0_6, %c0_7] : memref<8x128xf32, #tpu.memory_space<vmem>>, vector<8x128xf32>
    tpu.vector_store %arg7[%c0_6, %c0_7], %7 {strides = array<i32>} : memref<8x128xf32, #tpu.memory_space<vmem>>, vector<8x128xf32>,
    %c0_i32_8 = arith.constant 0 : i32
    %9 = arith.cmpi eq, %arg2, %c0_i32_8 : i32
    %10 = arith.extui %9 : i1 to i32
    %c0_i32_9 = arith.constant 0 : i32
    %11 = arith.cmpi ne, %10, %c0_i32_9 : i32
    scf.if %11 {
      %c0_10 = arith.constant 0 : index
      %c0_11 = arith.constant 0 : index
      %12 = vector.load %arg7[%c0_10, %c0_11] : memref<8x128xf32, #tpu.memory_space<vmem>>, vector<8x128xf32>
      %c0_12 = arith.constant 0 : index
      %c0_13 = arith.constant 0 : index
      %13 = vector.load %arg5[%c0_12, %c0_13] : memref<1x128xf32, #tpu.memory_space<vmem>>, vector<1x128xf32>
      %14 = vector.broadcast %13 : vector<1x128xf32> to vector<8x128xf32>
      %15 = arith.addf %12, %14 : vector<8x128xf32>
      %16 = math.tanh %15 : vector<8x128xf32>
      %c0_14 = arith.constant 0 : index
      %c0_15 = arith.constant 0 : index
      %17 = vector.load %arg6[%c0_14, %c0_15] : memref<8x128xf32, #tpu.memory_space<vmem>>, vector<8x128xf32>
      tpu.vector_store %arg6[%c0_14, %c0_15], %16 {strides = array<i32>} : memref<8x128xf32, #tpu.memory_space<vmem>>, vector<8x128xf32>,
    } else {
    }
    return
  }
  func.func @transform_0(%arg0: i32, %arg1: i32, %arg2: i32) -> (i32, i32) {
    %c0_i32 = arith.constant 0 : i32
    return %arg0, %arg2 : i32, i32
  }
  func.func @transform_1(%arg0: i32, %arg1: i32, %arg2: i32) -> (i32, i32) {
    %c0_i32 = arith.constant 0 : i32
    return %arg2, %arg1 : i32, i32
  }
  func.func @transform_2(%arg0: i32, %arg1: i32, %arg2: i32) -> (i32, i32) {
    %c0_i32 = arith.constant 0 : i32
    %c0_i32_0 = arith.constant 0 : i32
    return %c0_i32, %arg1 : i32, i32
  }
  func.func @transform_3(%arg0: i32, %arg1: i32, %arg2: i32) -> (i32, i32) {
    %c0_i32 = arith.constant 0 : i32
    return %arg0, %arg1 : i32, i32
  }
}

</mosaic_0001>

<bundles_post_ra>
// kernel: tpu_custom_call.1
= control target key start
LH: loop header
LB: loop body
LE: loop exit
PB: predicated region body
PF: predicated region fallthrough
CT: control target
= control target key end

     0   :  { %8 = vsyncpa [#allocation4], 0  ;;  %s399_s0 = inlined_call_operand.hbm [shape: f32[8,128], index: 0, kind: input, shape index: {}]   ;;  %s400_s1 = inlined_call_operand.hbm [shape: f32[128,128], index: 1, kind: input, shape index: {}]   ;;  %s401_s2 = inlined_call_operand.vmem [shape: f32[1,128], index: 2, kind: input, shape index: {}]   ;;  %s402_s3 = inlined_call_operand.hbm [shape: f32[8,128], index: 3, kind: output, shape index: {}]  }
   0x1   :  { %9 = vsyncpa [#allocation7], 0 }
   0x2   :  { %10 = vsyncpa [#allocation5], 0  ;;  %s325_s12 = smov [#allocation3]   ;;  %s326_s14 = smov [#allocation6]  }
   0x3   :  { %s17_s13 = sshll.u32 %s325_s12, 4  ;;  %s26_s15 = sshll.u32 %s326_s14, 4  ;;  %s18_s13 = int_to_ptr.vmem [resolvable:$true] %s17_s13  ;;  %s353_s15 = int_to_ptr.vmem [resolvable:$true] %s26_s15 }
   0x4   :  { %s253_s18 = scalar_lea.hbm %s399_s0, 128 }
   0x5   :  { %p254_p0 = scmp.ne.s32.totalorder %s399_s0, %s253_s18  ;;  %p257_p1 = scmp.lt.u32.totalorder %s253_s18, %s399_s0 }
   0x7   :  { %p259_p2 = pnand %p257_p1, %p254_p0 }
   0x9   :  { %262 = shalt.err (!%p259_p2)
}
   0xa   :  { %s263_s23 = scalar_lea.vmem %s18_s13, 128  ;;  %p268_p4 = scmp.lt.s32.totalorder %s18_s13, %s18_s13 }
   0xb   :  { %p264_p3 = scmp.ne.s32.totalorder %s18_s13, %s263_s23  ;;  %p269_p5 = scmp.lt.s32.totalorder %s263_s23, %s263_s23 }
   0xd   :  { %p270_p6 = por %p269_p5, %p268_p4 }
   0xf   :  { %p271_p7 = pnand %p270_p6, %p264_p3 }
  0x11   :  { %274 = shalt.err (!%p271_p7)
}
  0x12   :  { %20 = dma.hbm_to_vmem [thread:$0]  %s399_s0, 128, %s18_s13, [#allocation4]  }
  0x13   :  { %s275_s28 = scalar_lea.hbm %s400_s1, 2048 }
  0x14   :  { %p276_p8 = scmp.ne.s32.totalorder %s400_s1, %s275_s28  ;;  %p279_p9 = scmp.lt.u32.totalorder %s275_s28, %s400_s1 }
  0x16   :  { %p281_p10 = pnand %p279_p9, %p276_p8 }
  0x18   :  { %284 = shalt.err (!%p281_p10)
}
  0x19   :  { %s285_s6 = scalar_lea.vmem %s353_s15, 2048  ;;  %p290_p12 = scmp.lt.s32.totalorder %s353_s15, %s353_s15 }
  0x1a   :  { %p286_p11 = scmp.ne.s32.totalorder %s353_s15, %s285_s6  ;;  %p291_p13 = scmp.lt.s32.totalorder %s285_s6, %s285_s6 }
  0x1c   :  { %p292_p0 = por %p291_p13, %p290_p12 }
  0x1e   :  { %p293_p1 = pnand %p292_p0, %p286_p11 }
  0x20   :  { %296 = shalt.err (!%p293_p1)
}
  0x21   :  { %s327_s0 = smov 128   ;;  %s328_s7 = smov 8  }
  0x22   :  { %32 = dma.hbm_to_vmem [thread:$0]  %s400_s1, 2048, %s353_s15, [#allocation7], %s327_s0, %s327_s0, %s328_s7  }
  0x23   :  { %319 = dma.done.wait [#allocation4], 128  }
  0x24   :  { %320 = vsyncadd [#allocation4], 4294967168 }
  0x25   :  { %321 = dma.done.wait [#allocation7], 2048  }
  0x26   :  { %322 = vsyncadd [#allocation7], 4294965248  ;;  %v329_v0 = vmov 0.0|0.0   ;;  %vm330_vm0 = vmmov 0   ;;  %v331_v1 = vmov 0.0   ;;  %v48_v2 = vld [vmem:[#allocation6] sm:$0xff] }
  0x27   :  { %219 = vmatprep.subr.bf16.mxu0 %v329_v0  ;;  %216 = vmatprep.mubr.msk.f32.mxu0 %vm330_vm0, %v331_v1  ;;  %v49_v3 = vld [vmem:[#allocation6 + $0x8] sm:$0xff]  ;;  %v50_v4 = vld [vmem:[#allocation6 + $0x10] sm:$0xff]  ;;  %v51_v6 = vld [vmem:[#allocation6 + $0x18] sm:$0xff]  ;;  %s332_s11 = smov [#allocation8]  }
  0x28   :  { %v220_v5 = vpack.c.bf16 %v49_v3, %v48_v2  ;;  %v223_v7 = vpack.c.bf16 %v51_v6, %v50_v4  ;;  %v52_v8 = vld [vmem:[#allocation6 + $0x20] sm:$0xff]  ;;  %v53_v9 = vld [vmem:[#allocation6 + $0x28] sm:$0xff]  ;;  %v54_v11 = vld [vmem:[#allocation6 + $0x30] sm:$0xff]  ;;  %s156_s12 = sshll.u32 %s332_s11, 4  ;;  %s157_s12 = int_to_ptr.vmem [resolvable:$true] %s156_s12 }
  0x29   :  { %v226_v10 = vpack.c.bf16 %v53_v9, %v52_v8  ;;  %v55_v12 = vld [vmem:[#allocation6 + $0x38] sm:$0xff]  ;;  %v56_v14 = vld [vmem:[#allocation6 + $0x40] sm:$0xff]  ;;  %v57_v15 = vld [vmem:[#allocation6 + $0x48] sm:$0xff]  ;;  %s297_s13 = scalar_lea.vmem %s157_s12, 128  ;;  %p302_p3 = scmp.lt.s32.totalorder %s157_s12, %s157_s12 }
  0x2a   :  { %221 = vmatpush3.bf16.msra.mxu0 %v220_v5  ;;  %v229_v13 = vpack.c.bf16 %v55_v12, %v54_v11  ;;  %v232_v16 = vpack.c.bf16 %v57_v15, %v56_v14  ;;  %v58_v17 = vld [vmem:[#allocation6 + $0x50] sm:$0xff]  ;;  %v59_v18 = vld [vmem:[#allocation6 + $0x58] sm:$0xff]  ;;  %v60_v20 = vld [vmem:[#allocation6 + $0x60] sm:$0xff]  ;;  %p298_p2 = scmp.ne.s32.totalorder %s157_s12, %s297_s13  ;;  %p303_p4 = scmp.lt.s32.totalorder %s297_s13, %s297_s13 }
  0x2b   :  { %222 = vmatprep.subr.bf16.mxu0 %v329_v0  ;;  %v235_v19 = vpack.c.bf16 %v59_v18, %v58_v17  ;;  %v61_v21 = vld [vmem:[#allocation6 + $0x68] sm:$0xff]  ;;  %v62_v23 = vld [vmem:[#allocation6 + $0x70] sm:$0xff]  ;;  %v63_v24 = vld [vmem:[#allocation6 + $0x78] sm:$0xff] }
  0x2c   :  { %v238_v22 = vpack.c.bf16 %v61_v21, %v60_v20  ;;  %v241_v25 = vpack.c.bf16 %v63_v24, %v62_v23  ;;  %v47_v26 = vld [vmem:[#allocation3] sm:$0xff]  ;;  %p304_p5 = por %p303_p4, %p302_p3 }
  0x2d   :  { %v166_v27 = vld [vmem:[%s401_s2] ss:$0 sm:$0xff] }
  0x2e   :  { %224 = vmatpush3.bf16.msra.mxu0 %v223_v7  ;;  %p305_p6 = pnand %p304_p5, %p298_p2 }
  0x2f   :  { %225 = vmatprep.subr.bf16.mxu0 %v329_v0 }
  0x32   :  { %227 = vmatpush3.bf16.msra.mxu0 %v226_v10 }
  0x33   :  { %228 = vmatprep.subr.bf16.mxu0 %v329_v0 }
  0x36   :  { %230 = vmatpush3.bf16.msra.mxu0 %v229_v13 }
  0x37   :  { %231 = vmatprep.subr.bf16.mxu0 %v329_v0 }
  0x3a   :  { %233 = vmatpush3.bf16.msra.mxu0 %v232_v16 }
  0x3b   :  { %234 = vmatprep.subr.bf16.mxu0 %v329_v0 }
  0x3e   :  { %236 = vmatpush3.bf16.msra.mxu0 %v235_v19 }
  0x3f   :  { %237 = vmatprep.subr.bf16.mxu0 %v329_v0 }
  0x42   :  { %239 = vmatpush3.bf16.msra.mxu0 %v238_v22 }
  0x43   :  { %240 = vmatprep.subr.bf16.mxu0 %v329_v0 }
  0x46   :  { %242 = vmatpush3.bf16.msra.mxu0 %v241_v25 }
  0x49   :  { %217 = vmatmul.mubr.f32.vlgmr.msra.gmra.mrb[0].mxu0 %v47_v26 }
 0x11c   :  { %v130_v28 = vpop.f32.mrb[0].mxu0 }
 0x11d   :  { %v147_v29 = vadd.f32 %v166_v27, %v130_v28  ;;  %v218_v30 = vpop.f32.mrb[1].mxu0 }
 0x11f   :  { %251 = vtanh.f32 %v147_v29 }
 0x129   :  { %v252_v31 = vpop.eup %251 }
 0x12a   :  { %149 = vst [vmem:[#allocation8] sm:$0xff] %v252_v31 }
 0x12b   :  { %308 = shalt.err (!%p305_p6)
}
 0x12c   :  { %s309_s2 = scalar_lea.hbm %s402_s3, 128 }
 0x12d   :  { %p310_p7 = scmp.ne.s32.totalorder %s402_s3, %s309_s2  ;;  %p313_p8 = scmp.lt.u32.totalorder %s309_s2, %s402_s3 }
 0x12f   :  { %p315_p9 = pnand %p313_p8, %p310_p7 }
 0x131   :  { %318 = shalt.err (!%p315_p9)
}
 0x132   :  { %159 = dma.vmem_to_hbm [thread:$0]  %s157_s12, 128, %s402_s3, [#allocation5]  }
 0x133   :  { %323 = dma.done.wait [#allocation5], 128  }
 0x134   :  { %324 = vsyncadd [#allocation5], 4294967168 }
 0x135   :  { %163 = vsyncpa [#allocation4], 1 }
 0x136   :  { %164 = vsyncpa [#allocation7], 1 }
 0x137   :  { %165 = vsyncpa [#allocation5], 1 }

</bundles_post_ra>
